<compile_context>
chip_gen: v6e
topology: v6e:2x2x1
jax: 0.10.0
libtpu: 0.0.40
codegen_flags: <defaults>
</compile_context>

<pallas_src>
import jax
import jax.numpy as jnp
from jax.experimental import pallas as pl
from jax.experimental.pallas import tpu as pltpu


# ---------------------------------------------------------------------------
# Defensive hardware queries (fall back to conservative values).
# ---------------------------------------------------------------------------

def _vmem_capacity_bytes():
    try:
        info = pltpu.get_tpu_info()
        v = getattr(info, "vmem_capacity_bytes", None)
        if v:
            return int(v)
    except Exception:
        pass
    return 64 << 20          # conservative (v7x); v5e/v6e have 128 MiB


def _tensorcores_per_chip():
    try:
        info = pltpu.get_tpu_info()
        for attr in ("num_cores", "core_count", "num_tensorcores",
                     "tensorcores_per_chip"):
            v = getattr(info, attr, None)
            if isinstance(v, int) and v > 0:
                return v
    except Exception:
        pass
    try:
        kind = jax.devices()[0].device_kind.lower()
        if ("v4" in kind) or ("v5p" in kind) or ("v7" in kind):
            return 2         # megacore chips: keep one token tile per core
    except Exception:
        pass
    return 1                 # v5e / v6e: single TensorCore


# ---------------------------------------------------------------------------
# Kernel
# ---------------------------------------------------------------------------

def _moe_expert_kernel(flags_ref, eff_ref,                 # SMEM scalar-prefetch
                       g_ref, x_ref, w1_ref, b1_ref, w2_ref, b2_ref,
                       o_ref):
    # eff_ref is only consumed by the index_maps (data-dependent weight blocks).
    i = pl.program_id(0)     # token tile   (parallel)
    f = pl.program_id(1)     # d_ff chunk   (reduction)
    e = pl.program_id(2)     # expert       (reduction; innermost so inactive
                             #               experts' weight DMAs dedup away)

    @pl.when(jnp.logical_and(f == 0, e == 0))
    def _init():
        o_ref[...] = jnp.zeros_like(o_ref)

    @pl.when(flags_ref[i, e] != 0)
    def _compute():
        g = g_ref[0]                                                 # (tn, 1) f32
        # bf16 MXU matmuls, f32 accumulation.
        h = jnp.dot(x_ref[...], w1_ref[0],
                    preferred_element_type=jnp.float32)              # (tn, t_ff)
        h = jnp.maximum(h + b1_ref[0], 0.0)                          # ReLU (f32)
        # TODO(synk): FFN dropout(p=0.1) is identity in eval mode; not applied.
        y = jnp.dot(h.astype(jnp.bfloat16), w2_ref[0],
                    preferred_element_type=jnp.float32)              # (tn, d)
        o_ref[...] += g * y

        @pl.when(f == 0)
        def _bias():                        # output bias once per active expert
            o_ref[...] += g * b2_ref[0]


# ---------------------------------------------------------------------------
# Tiling / wrapper
# ---------------------------------------------------------------------------

def _pick_tiles(N, d, d_ff, vmem_budget, min_tiles):
    # Token-tile candidates: divisors of N that are multiples of 16 (bf16
    # sublane packing); N itself is always a legal block.
    tn_cands = [c for c in range(min(N, 2048), 15, -1)
                if N % c == 0 and c % 16 == 0] or [N]
    # d_ff-chunk candidates: divisors of d_ff that are multiples of 128
    # (lane-dense MXU tiles); d_ff itself is always legal.
    tff_cands = [c for c in range(min(d_ff, 2048), 127, -1)
                 if d_ff % c == 0 and c % 128 == 0] or [d_ff]

    def est(tn, t_ff):
        blocks = (tn * d * 2 + tn * 4          # x (bf16) + gate column (f32)
                  + d * t_ff * 2 + t_ff * 4    # w1 (bf16) + b1 (f32)
                  + t_ff * d * 2 + d * 4)      # w2 (bf16) + b2 (f32)
        out = tn * d * 4                       # resident f32 accumulator
        inter = tn * t_ff * 6 + tn * d * 4     # h f32 + h bf16 copy + y f32
        return 2 * blocks + 2 * out + inter + (4 << 20)   # + compiler scratch

    # Prefer >= min_tiles token tiles (one per TensorCore on megacore chips);
    # on single-TC chips min_tiles == 1 so the largest tile wins.
    tn_order = [c for c in tn_cands if N // c >= min_tiles] or tn_cands
    for tn in tn_order:
        for t_ff in tff_cands:                 # shrink t_ff before tn
            if est(tn, t_ff) <= vmem_budget:
                return tn, t_ff
    return tn_order[-1], tff_cands[-1]


def moe_expert_mix(x_bf16, w1, b1, w2, b2, combine):
    """Gated dense-MoE combine: y[n] = sum_e combine[n, e] * FFN_e(x[n]).

    x_bf16:  (N, d)        bfloat16
    w1:      (E, d, d_ff)  bfloat16      b1: (E, 1, d_ff) float32
    w2:      (E, d_ff, d)  bfloat16      b2: (E, 1, d)    float32
    combine: (N, E)        float32; exactly zero for non-routed (token, expert).
    """
    N, d = x_bf16.shape
    E, _, d_ff = w1.shape

    vmem_cap = _vmem_capacity_bytes()
    vmem_budget = max(min(int(vmem_cap * 0.78), vmem_cap - (24 << 20)), 32 << 20)
    min_tiles = _tensorcores_per_chip()
    tn, t_ff = _pick_tiles(N, d, d_ff, vmem_budget, min_tiles)
    num_tiles = N // tn
    num_ff = d_ff // t_ff
    grid = (num_tiles, num_ff, E)

    # Per-(token tile, expert) activity flags -> SMEM scalar prefetch; the
    # kernel skips both matmuls for experts unused by the whole tile.
    flags = (combine.reshape(num_tiles, tn, E) != 0.0).any(axis=1).astype(jnp.int32)

    # "Effective expert" table: inactive (tile, expert) steps are remapped to
    # the most recently fetched active expert, so their weight block index
    # equals the previous grid step's and Pallas elides the weight DMA.
    flat = flags.reshape(-1)
    ids = jnp.arange(num_tiles * E, dtype=jnp.int32)
    last_active = jnp.maximum(
        jax.lax.cummax(jnp.where(flat != 0, ids, -1), axis=0), 0)
    eff = (last_active % E).astype(jnp.int32).reshape(num_tiles, E)

    # Gate columns pre-laid-out as (E, N, 1): the BlockSpec delivers the
    # (tn, 1) column directly; no in-kernel cross-lane select.
    combine_t = combine.T.reshape(E, N, 1).astype(jnp.float32)

    return pl.pallas_call(
        _moe_expert_kernel,
        out_shape=jax.ShapeDtypeStruct((N, d), jnp.float32),
        grid_spec=pltpu.PrefetchScalarGridSpec(
            num_scalar_prefetch=2,
            grid=grid,
            in_specs=[
                pl.BlockSpec((1, tn, 1),
                             lambda i, f, e, fl, ef: (e, i, 0)),          # gate col
                pl.BlockSpec((tn, d),
                             lambda i, f, e, fl, ef: (i, 0)),             # x (bf16)
                pl.BlockSpec((1, d, t_ff),
                             lambda i, f, e, fl, ef: (ef[i, e], 0, f)),   # w1
                pl.BlockSpec((1, 1, t_ff),
                             lambda i, f, e, fl, ef: (ef[i, e], 0, f)),   # b1
                pl.BlockSpec((1, t_ff, d),
                             lambda i, f, e, fl, ef: (ef[i, e], f, 0)),   # w2
                pl.BlockSpec((1, 1, d),
                             lambda i, f, e, fl, ef: (ef[i, e], 0, 0)),   # b2
            ],
            out_specs=pl.BlockSpec((tn, d), lambda i, f, e, fl, ef: (i, 0)),
        ),
        compiler_params=pltpu.CompilerParams(
            dimension_semantics=("parallel", "arbitrary", "arbitrary"),
            vmem_limit_bytes=int(vmem_budget)),
    )(flags, eff, combine_t, x_bf16, w1, b1, w2, b2)


# ---------------------------------------------------------------------------
# Router (tiny (N, E) math stays in plain JAX glue) and layer wrapper
# ---------------------------------------------------------------------------

def topk_combine_weights(x2d, wg, k):
    # TODO(synk): DeepSpeed TopKGate capacity factor / token dropping is not
    # modeled; dense no-drop evaluation is used (l_aux / exp_counts dropped).
    logits = x2d.astype(jnp.float32) @ wg.astype(jnp.float32)     # (N, E)
    probs = jax.nn.softmax(logits, axis=-1)
    vals, idx = jax.lax.top_k(probs, k)                           # (N, k)
    vals = vals / jnp.sum(vals, axis=-1, keepdims=True)           # renormalize
    onehot = jax.nn.one_hot(idx, probs.shape[-1], dtype=vals.dtype)  # (N, k, E)
    return jnp.sum(onehot * vals[..., None], axis=1)              # (N, E) f32


def prepare_params(params, use_residual):
    """One-time weight prep (bf16 casts + residual-expert concat) at load time."""
    w1 = params["w1"].astype(jnp.bfloat16)
    w2 = params["w2"].astype(jnp.bfloat16)
    b1 = params["b1"].astype(jnp.float32)
    b2 = params["b2"].astype(jnp.float32)
    prepared = {"wg": params["wg"].astype(jnp.float32)}
    if use_residual:
        # Residual expert fused into the kernel as expert index E.
        w1 = jnp.concatenate([w1, params["rw1"].astype(jnp.bfloat16)], axis=0)
        b1 = jnp.concatenate([b1, params["rb1"].astype(jnp.float32)], axis=0)
        w2 = jnp.concatenate([w2, params["rw2"].astype(jnp.bfloat16)], axis=0)
        b2 = jnp.concatenate([b2, params["rb2"].astype(jnp.float32)], axis=0)
        prepared["wc"] = params["wc"].astype(jnp.float32)
        prepared["bc"] = params["bc"].astype(jnp.float32)
    prepared.update({"w1": w1, "b1": b1, "w2": w2, "b2": b2})
    return prepared


def layer_forward(x, prepared, *, k, use_residual):
    B, S, d = x.shape
    N = B * S
    x2d = x.reshape(N, d).astype(jnp.float32)

    combine = topk_combine_weights(x2d, prepared["wg"], k)        # (N, E) f32

    if use_residual:
        #   y = coef0 * sum_e combine_e * FFN_e(x) + coef1 * FFN_res(x)
        coef = jax.nn.softmax(x2d @ prepared["wc"] + prepared["bc"], axis=-1)
        combine = jnp.concatenate(
            [combine * coef[:, 0:1], coef[:, 1:2]], axis=-1)      # (N, E+1)

    x_bf = x2d.astype(jnp.bfloat16)                               # cast once
    y2d = moe_expert_mix(x_bf, prepared["w1"], prepared["b1"],
                         prepared["w2"], prepared["b2"], combine)  # (N, d) f32
    return y2d.astype(x.dtype).reshape(B, S, d)


def init_params(key, d, d_ff, expert_num, use_residual):
    ks = jax.random.split(key, 8)
    s_in = 1.0 / jnp.sqrt(d)
    s_hid = 1.0 / jnp.sqrt(d_ff)
    params = {
        "wg": jax.random.normal(ks[0], (d, expert_num), jnp.float32) * s_in,
        "w1": jax.random.normal(ks[1], (expert_num, d, d_ff), jnp.float32) * s_in,
        "b1": jnp.zeros((expert_num, 1, d_ff), jnp.float32),
        "w2": jax.random.normal(ks[2], (expert_num, d_ff, d), jnp.float32) * s_hid,
        "b2": jnp.zeros((expert_num, 1, d), jnp.float32),
    }
    if use_residual:
        params.update({
            "rw1": jax.random.normal(ks[3], (1, d, d_ff), jnp.float32) * s_in,
            "rb1": jnp.zeros((1, 1, d_ff), jnp.float32),
            "rw2": jax.random.normal(ks[4], (1, d_ff, d), jnp.float32) * s_hid,
            "rb2": jnp.zeros((1, 1, d), jnp.float32),
            "wc": jax.random.normal(ks[5], (d, 2), jnp.float32) * s_in,
            "bc": jnp.zeros((2,), jnp.float32),
        })
    return params


if __name__ == "__main__":
    # NOTE: demo shapes are intentionally small; for production keep d and
    # t_ff multiples of 256 (v6e/v7x MXU) / 128 (v5e) and d a large multiple
    # of 128 so output stores are lane-dense.
    d, d_ff, expert_num, k, use_residual = 32, 64, 4, 2, True
    B, S = 2, 8

    key = jax.random.PRNGKey(0)
    kx, kp = jax.random.split(key)
    x = jax.random.normal(kx, (B, S, d), jnp.float32)
    params = init_params(kp, d, d_ff, expert_num, use_residual)
    prepared = prepare_params(params, use_residual)   # load-time prep

    y = layer_forward(x, prepared, k=k, use_residual=use_residual)
    y = jax.block_until_ready(y)
    assert y.shape == (B, S, d)
    print("KERNEL_OK")
</pallas_src>

<mosaic_0001>
module attributes {stable_mosaic.version = 11 : i64} {
  func.func @_moe_expert_kernel(%arg0: i32, %arg1: i32, %arg2: i32, %arg3: memref<1x5xi32, #tpu.memory_space<smem>>, %arg4: memref<1x5xi32, #tpu.memory_space<smem>>, %arg5: memref<1x16x1xf32, #tpu.memory_space<vmem>>, %arg6: memref<16x32xbf16, #tpu.memory_space<vmem>>, %arg7: memref<1x32x64xbf16, #tpu.memory_space<vmem>>, %arg8: memref<1x1x64xf32, #tpu.memory_space<vmem>>, %arg9: memref<1x64x32xbf16, #tpu.memory_space<vmem>>, %arg10: memref<1x1x32xf32, #tpu.memory_space<vmem>>, %arg11: memref<16x32xf32, #tpu.memory_space<vmem>>) attributes {dimension_semantics = [#tpu.dimension_semantics<parallel>, #tpu.dimension_semantics<arbitrary>, #tpu.dimension_semantics<arbitrary>], iteration_bounds = array<i64: 1, 1, 5>, scalar_prefetch = 2 : i64, scratch_operands = 0 : i64, tpu.core_type = #tpu.core_type<tc>, window_params = [{transform_indices = @transform_0, window_bounds = array<i64: 1, 16, 1>}, {transform_indices = @transform_1, window_bounds = array<i64: 16, 32>}, {transform_indices = @transform_2, window_bounds = array<i64: 1, 32, 64>}, {transform_indices = @transform_3, window_bounds = array<i64: 1, 1, 64>}, {transform_indices = @transform_4, window_bounds = array<i64: 1, 64, 32>}, {transform_indices = @transform_5, window_bounds = array<i64: 1, 1, 32>}, {transform_indices = @transform_6, window_bounds = array<i64: 16, 32>}]} {
    %c0_i32 = arith.constant 0 : i32
    %0 = arith.cmpi eq, %arg1, %c0_i32 : i32
    %c0_i32_0 = arith.constant 0 : i32
    %1 = arith.cmpi eq, %arg2, %c0_i32_0 : i32
    %2 = arith.andi %0, %1 : i1
    %3 = arith.extui %2 : i1 to i32
    %c0_i32_1 = arith.constant 0 : i32
    %4 = arith.cmpi ne, %3, %c0_i32_1 : i32
    scf.if %4 {
      %cst = arith.constant 0.000000e+00 : f32
      %11 = vector.broadcast %cst : f32 to vector<16x32xf32>
      %c0 = arith.constant 0 : index
      %c0_4 = arith.constant 0 : index
      %12 = vector.load %arg11[%c0, %c0_4] : memref<16x32xf32, #tpu.memory_space<vmem>>, vector<16x32xf32>
      tpu.vector_store %arg11[%c0, %c0_4], %11 {strides = array<i32>} : memref<16x32xf32, #tpu.memory_space<vmem>>, vector<16x32xf32>,
    } else {
    }
    %5 = arith.index_cast %arg0 : i32 to index
    %6 = arith.index_cast %arg2 : i32 to index
    %7 = memref.load %arg3[%5, %6] : memref<1x5xi32, #tpu.memory_space<smem>>
    %c0_i32_2 = arith.constant 0 : i32
    %8 = arith.cmpi ne, %7, %c0_i32_2 : i32
    %9 = arith.extui %8 : i1 to i32
    %c0_i32_3 = arith.constant 0 : i32
    %10 = arith.cmpi ne, %9, %c0_i32_3 : i32
    scf.if %10 {
      %c0 = arith.constant 0 : index
      %c0_4 = arith.constant 0 : index
      %c0_5 = arith.constant 0 : index
      %11 = vector.load %arg5[%c0, %c0_4, %c0_5] : memref<1x16x1xf32, #tpu.memory_space<vmem>>, vector<1x16x1xf32>
      %12 = vector.shape_cast %11 : vector<1x16x1xf32> to vector<16x1xf32>
      %c0_6 = arith.constant 0 : index
      %c0_7 = arith.constant 0 : index
      %13 = vector.load %arg6[%c0_6, %c0_7] : memref<16x32xbf16, #tpu.memory_space<vmem>>, vector<16x32xbf16>
      %c0_8 = arith.constant 0 : index
      %c0_9 = arith.constant 0 : index
      %c0_10 = arith.constant 0 : index
      %14 = vector.load %arg7[%c0_8, %c0_9, %c0_10] : memref<1x32x64xbf16, #tpu.memory_space<vmem>>, vector<1x32x64xbf16>
      %15 = vector.shape_cast %14 : vector<1x32x64xbf16> to vector<32x64xbf16>
      %cst = arith.constant dense<0.000000e+00> : vector<16x64xf32>
      %16 = tpu.matmul %13, %15, %cst {dimension_numbers = #tpu.dot_dimension_numbers<[1], [0], [0], [1], [0, 0, 1, 1], [], []>} : vector<16x32xbf16>, vector<32x64xbf16>, vector<16x64xf32> -> vector<16x64xf32>
      %c0_11 = arith.constant 0 : index
      %c0_12 = arith.constant 0 : index
      %c0_13 = arith.constant 0 : index
      %17 = vector.load %arg8[%c0_11, %c0_12, %c0_13] : memref<1x1x64xf32, #tpu.memory_space<vmem>>, vector<1x1x64xf32>
      %18 = vector.shape_cast %17 : vector<1x1x64xf32> to vector<1x64xf32>
      %19 = vector.broadcast %18 : vector<1x64xf32> to vector<16x64xf32>
      %20 = arith.addf %16, %19 : vector<16x64xf32>
      %cst_14 = arith.constant 0.000000e+00 : f32
      %21 = vector.broadcast %cst_14 : f32 to vector<16x64xf32>
      %22 = arith.maximumf %20, %21 : vector<16x64xf32>
      %23 = arith.truncf %22 : vector<16x64xf32> to vector<16x64xbf16>
      %c0_15 = arith.constant 0 : index
      %c0_16 = arith.constant 0 : index
      %c0_17 = arith.constant 0 : index
      %24 = vector.load %arg9[%c0_15, %c0_16, %c0_17] : memref<1x64x32xbf16, #tpu.memory_space<vmem>>, vector<1x64x32xbf16>
      %25 = vector.shape_cast %24 : vector<1x64x32xbf16> to vector<64x32xbf16>
      %cst_18 = arith.constant dense<0.000000e+00> : vector<16x32xf32>
      %26 = tpu.matmul %23, %25, %cst_18 {dimension_numbers = #tpu.dot_dimension_numbers<[1], [0], [0], [1], [0, 0, 1, 1], [], []>} : vector<16x64xbf16>, vector<64x32xbf16>, vector<16x32xf32> -> vector<16x32xf32>
      %c0_19 = arith.constant 0 : index
      %c0_20 = arith.constant 0 : index
      %27 = vector.load %arg11[%c0_19, %c0_20] : memref<16x32xf32, #tpu.memory_space<vmem>>, vector<16x32xf32>
      %28 = vector.broadcast %12 : vector<16x1xf32> to vector<16x32xf32>
      %29 = arith.mulf %28, %26 : vector<16x32xf32>
      %30 = arith.addf %27, %29 : vector<16x32xf32>
      %c0_21 = arith.constant 0 : index
      %c0_22 = arith.constant 0 : index
      %31 = vector.load %arg11[%c0_21, %c0_22] : memref<16x32xf32, #tpu.memory_space<vmem>>, vector<16x32xf32>
      tpu.vector_store %arg11[%c0_21, %c0_22], %30 {strides = array<i32>} : memref<16x32xf32, #tpu.memory_space<vmem>>, vector<16x32xf32>,
      %c0_i32_23 = arith.constant 0 : i32
      %32 = arith.cmpi eq, %arg1, %c0_i32_23 : i32
      %33 = arith.extui %32 : i1 to i32
      %c0_i32_24 = arith.constant 0 : i32
      %34 = arith.cmpi ne, %33, %c0_i32_24 : i32
      scf.if %34 {
        %c0_25 = arith.constant 0 : index
        %c0_26 = arith.constant 0 : index
        %35 = vector.load %arg11[%c0_25, %c0_26] : memref<16x32xf32, #tpu.memory_space<vmem>>, vector<16x32xf32>
        %c0_27 = arith.constant 0 : index
        %c0_28 = arith.constant 0 : index
        %c0_29 = arith.constant 0 : index
        %36 = vector.load %arg10[%c0_27, %c0_28, %c0_29] : memref<1x1x32xf32, #tpu.memory_space<vmem>>, vector<1x1x32xf32>
        %37 = vector.shape_cast %36 : vector<1x1x32xf32> to vector<1x32xf32>
        %38 = vector.broadcast %12 : vector<16x1xf32> to vector<16x32xf32>
        %39 = vector.broadcast %37 : vector<1x32xf32> to vector<16x32xf32>
        %40 = arith.mulf %38, %39 : vector<16x32xf32>
        %41 = arith.addf %35, %40 : vector<16x32xf32>
        %c0_30 = arith.constant 0 : index
        %c0_31 = arith.constant 0 : index
        %42 = vector.load %arg11[%c0_30, %c0_31] : memref<16x32xf32, #tpu.memory_space<vmem>>, vector<16x32xf32>
        tpu.vector_store %arg11[%c0_30, %c0_31], %41 {strides = array<i32>} : memref<16x32xf32, #tpu.memory_space<vmem>>, vector<16x32xf32>,
      } else {
      }
    } else {
    }
    return
  }
  func.func @transform_0(%arg0: i32, %arg1: i32, %arg2: i32, %arg3: memref<1x5xi32, #tpu.memory_space<smem>>, %arg4: memref<1x5xi32, #tpu.memory_space<smem>>) -> (i32, i32, i32) {
    %c0_i32 = arith.constant 0 : i32
    %c0_i32_0 = arith.constant 0 : i32
    return %arg2, %arg0, %c0_i32 : i32, i32, i32
  }
  func.func @transform_1(%arg0: i32, %arg1: i32, %arg2: i32, %arg3: memref<1x5xi32, #tpu.memory_space<smem>>, %arg4: memref<1x5xi32, #tpu.memory_space<smem>>) -> (i32, i32) {
    %c0_i32 = arith.constant 0 : i32
    %c0_i32_0 = arith.constant 0 : i32
    return %arg0, %c0_i32 : i32, i32
  }
  func.func @transform_2(%arg0: i32, %arg1: i32, %arg2: i32, %arg3: memref<1x5xi32, #tpu.memory_space<smem>>, %arg4: memref<1x5xi32, #tpu.memory_space<smem>>) -> (i32, i32, i32) {
    %0 = arith.index_cast %arg0 : i32 to index
    %1 = arith.index_cast %arg2 : i32 to index
    %2 = memref.load %arg4[%0, %1] : memref<1x5xi32, #tpu.memory_space<smem>>
    %c0_i32 = arith.constant 0 : i32
    %c0_i32_0 = arith.constant 0 : i32
    return %2, %c0_i32, %arg1 : i32, i32, i32
  }
  func.func @transform_3(%arg0: i32, %arg1: i32, %arg2: i32, %arg3: memref<1x5xi32, #tpu.memory_space<smem>>, %arg4: memref<1x5xi32, #tpu.memory_space<smem>>) -> (i32, i32, i32) {
    %0 = arith.index_cast %arg0 : i32 to index
    %1 = arith.index_cast %arg2 : i32 to index
    %2 = memref.load %arg4[%0, %1] : memref<1x5xi32, #tpu.memory_space<smem>>
    %c0_i32 = arith.constant 0 : i32
    %c0_i32_0 = arith.constant 0 : i32
    return %2, %c0_i32, %arg1 : i32, i32, i32
  }
  func.func @transform_4(%arg0: i32, %arg1: i32, %arg2: i32, %arg3: memref<1x5xi32, #tpu.memory_space<smem>>, %arg4: memref<1x5xi32, #tpu.memory_space<smem>>) -> (i32, i32, i32) {
    %0 = arith.index_cast %arg0 : i32 to index
    %1 = arith.index_cast %arg2 : i32 to index
    %2 = memref.load %arg4[%0, %1] : memref<1x5xi32, #tpu.memory_space<smem>>
    %c0_i32 = arith.constant 0 : i32
    %c0_i32_0 = arith.constant 0 : i32
    return %2, %arg1, %c0_i32 : i32, i32, i32
  }
  func.func @transform_5(%arg0: i32, %arg1: i32, %arg2: i32, %arg3: memref<1x5xi32, #tpu.memory_space<smem>>, %arg4: memref<1x5xi32, #tpu.memory_space<smem>>) -> (i32, i32, i32) {
    %0 = arith.index_cast %arg0 : i32 to index
    %1 = arith.index_cast %arg2 : i32 to index
    %2 = memref.load %arg4[%0, %1] : memref<1x5xi32, #tpu.memory_space<smem>>
    %c0_i32 = arith.constant 0 : i32
    %c0_i32_0 = arith.constant 0 : i32
    %c0_i32_1 = arith.constant 0 : i32
    return %2, %c0_i32, %c0_i32_0 : i32, i32, i32
  }
  func.func @transform_6(%arg0: i32, %arg1: i32, %arg2: i32, %arg3: memref<1x5xi32, #tpu.memory_space<smem>>, %arg4: memref<1x5xi32, #tpu.memory_space<smem>>) -> (i32, i32) {
    %c0_i32 = arith.constant 0 : i32
    %c0_i32_0 = arith.constant 0 : i32
    return %arg0, %c0_i32 : i32, i32
  }
}

</mosaic_0001>

<bundles_post_ra>
// kernel: tpu_custom_call.1
= control target key start
LH: loop header
LB: loop body
LE: loop exit
PB: predicated region body
PF: predicated region fallthrough
CT: control target
= control target key end

     0   :  { %s1362_s0 = inlined_call_operand.vmem [shape: s32[1,5], index: 0, kind: input, shape index: {}]   ;;  %s1363_s2 = inlined_call_operand.vmem [shape: f32[5,16,1], index: 2, kind: input, shape index: {}]   ;;  %s1364_s3 = inlined_call_operand.vmem [shape: bf16[16,32], index: 3, kind: input, shape index: {}]   ;;  %s1365_s4 = inlined_call_operand.vmem [shape: bf16[5,32,64], index: 4, kind: input, shape index: {}]   ;;  %s1366_s5 = inlined_call_operand.vmem [shape: f32[5,1,64], index: 5, kind: input, shape index: {}]   ;;  %s1367_s6 = inlined_call_operand.vmem [shape: bf16[5,64,32], index: 6, kind: input, shape index: {}]   ;;  %s1368_s7 = inlined_call_operand.vmem [shape: f32[5,1,32], index: 7, kind: input, shape index: {}]   ;;  %s1369_s8 = inlined_call_operand.hbm [shape: f32[16,32], index: 8, kind: output, shape index: {}]   ;;  %s1370_s1 = inlined_call_operand.vmem [shape: s32[1,5], index: 1, kind: input, shape index: {}]  }
   0x1   :  { %s13_s29 = sshll.u32 %s1362_s0, 4  ;;  %s17_s10 = sshll.u32 %s1370_s1, 4  ;;  %s14_s29 = int_to_ptr.vmem [resolvable:$true] %s13_s29  ;;  %s18_s10 = int_to_ptr.vmem [resolvable:$true] %s17_s10 }
   0x2   :  { %s1121_s11 = scalar_lea.vmem %s14_s29, 16  ;;  %p1126_p1 = scmp.lt.s32.totalorder %s14_s29, %s14_s29 }
   0x3   :  { %p1122_p0 = scmp.ne.s32.totalorder %s14_s29, %s1121_s11  ;;  %p1127_p2 = scmp.lt.s32.totalorder %s1121_s11, %s1121_s11 }
   0x5   :  { %p1128_p3 = por %p1127_p2, %p1126_p1 }
   0x7   :  { %p1129_p4 = pnand %p1128_p3, %p1122_p0 }
   0x9   :  { %1132 = shalt.err (!%p1129_p4)  }
   0xa   :  { %s1199_s12 = smov [#allocation3]   ;;  %s1133_s13 = scalar_lea.vmem %s18_s10, 16 }
   0xb   :  { %16 = dma.vmem_to_smem %s14_s29, 16, %s1199_s12, [#allocation2] }
   0xc   :  { %p1134_p5 = scmp.ne.s32.totalorder %s18_s10, %s1133_s13  ;;  %p1138_p6 = scmp.lt.s32.totalorder %s18_s10, %s18_s10 }
   0xd   :  { %p1139_p7 = scmp.lt.s32.totalorder %s1133_s13, %s1133_s13 }
   0xf   :  { %p1140_p8 = por %p1139_p7, %p1138_p6 }
  0x11   :  { %p1141_p9 = pnand %p1140_p8, %p1134_p5 }
  0x13   :  { %1144 = shalt.err (!%p1141_p9)  }
  0x14   :  { %s1200_s0 = smov [#allocation4]  }
  0x15   :  { %20 = dma.vmem_to_smem %s18_s10, 16, %s1200_s0, [#allocation2] }
  0x16   :  { %1181 = dma.done.wait [#allocation2], 32 }
  0x17   :  { %1182 = vsyncadd [#allocation2], 4294967264 }
  0x18   :  { %22 = sfence }
  0x19   :  { %23 = vsyncpa [#allocation6], 0  ;;  %s1259_s1 = smov 0   ;;  %s1261_s14 = smov 0  }
  0x1a   :  { %s1263_s15 = smov 0  }
  0x1b LB: > { %s1001_s16 = sadd.s32 4294967295, %s1197_s15   ;;  %s41_s17 = sadd.s32 1, %s1193_s14  ;;  %s1197_s15 = sphi %s1263_s15, %s29_s15   ;;  %s1193_s14 = sphi %s1261_s14, %s1373_s14   ;;  %s1189_s1 = sphi %s1259_s1, %s1372_s1  }
  0x1c   : > { %p42_p10 = scmp.ge.s32.totalorder %s41_s17, 5  ;;  %p1013_p11 = scmp.ge.s32.totalorder %s1197_s15, 1 }
  0x1d   : > { %p443_p12 = scmp.lt.s32.totalorder %s1197_s15, 6 }
  0x1e   : > { %s1375_s17 = smov (%p42_p10, %s41_s17), 0 }
  0x1f   : > { %p444_p13 = pnand %p1013_p11, %p443_p12 }
  0x20   : > { %p536_p0 = scmp.lt.s32.totalorder (!%p444_p13), %s1189_s1, 4  ;;  %s551_s18 = sshra.s32 (!%p444_p13), %s1189_s1, 7 }
  0x21   : > { %447 = sbr.rel (%p444_p13) target bundleno = 506 (0x1fa), region = 44  ;;  %s1016_s19 = sshll.u32 (!%p444_p13), %s551_s18, 7 }
  0x22   : > { %s556_s20 = sand.u32 (!%p444_p13), 127, %s1189_s1  ;;  %p645_p1 = scmp.eq.s32.totalorder (!%p444_p13), %s1189_s1, 0 }
  0x23   : > { %s557_s22 = sadd.s32 (!%p444_p13), %s1016_s19, %s556_s20 }
  0x24   : > { %s558_s24 = sld [smem:[#allocation4 + %s557_s22]] (!%p444_p13) }
  0x25   : > { %s582_s28 = sld [smem:[#allocation4 + %s557_s22]] (!%p444_p13) }
  0x26   : > { %s537_s21 = scalar_select %p536_p0, %s1189_s1, 4  ;;  %vm650_vm0 = vcmask (%p645_p1), 261120   ;;  %v1201_v0 = vmov (%p645_p1), 0.0  }
  0x27   : > { %s604_s29 = sld [smem:[#allocation4 + %s557_s22]]  ;;  %651 = vst.msk [vmem:[#allocation5] sm:$0xff] (%p645_p1), %vm650_vm0, %v1201_v0  ;;  %652 = vst.msk [vmem:[#allocation5 + $0x8] sm:$0xff] (%p645_p1), %vm650_vm0, %v1201_v0 }
  0x28   : > { %s1042_s23 = sshll.u32 %s537_s21, 4  ;;  %s630_s30 = sld [smem:[#allocation4 + %s557_s22]] }
  0x29   : > { %s1288_s27 = scalar_lea.vmem %s1363_s2, %s1042_s23 }
  0x2a   : > { %p559_p2 = scmp.lt.s32.totalorder %s558_s24, 4 }
  0x2b   : > { %p583_p3 = scmp.lt.s32.totalorder %s582_s28, 4 }
  0x2c   : > { %s1377_s24 = smov (!%p559_p2, %s558_s24), 4 }
  0x2d   : > { %s1379_s28 = smov (!%p583_p3, %s582_s28), 4  ;;  %s1043_s9 = sshll.u32 %s1377_s24, 4 }
  0x2e   : > { %p606_p4 = scmp.lt.s32.totalorder %s604_s29, 4  ;;  %s566_s12 = scalar_lea.vmem %s1365_s4, %s1043_s9 }
  0x2f   : > { %s588_s18 = scalar_lea.vmem %s1366_s5, %s1379_s28  ;;  %p631_p5 = scmp.lt.s32.totalorder %s630_s30, 4 }
  0x30   : > { %s1381_s29 = smov (!%p606_p4, %s604_s29), 4  ;;  %649 = sbr.rel (!%p645_p1) target bundleno = 53 (0x35), region = 48 }
  0x31   : > { %s1044_s19 = sshll.u32 %s1381_s29, 5  ;;  %s1383_s30 = smov (!%p631_p5, %s630_s30), 4 }
  0x32   : > { %s1302_s23 = scalar_lea.vmem %s1367_s6, %s1044_s19  ;;  %s633_s26 = scalar_lea.vmem %s1368_s7, %s1383_s30 }
  0x35 PF: > { %s660_s29 = sld [smem:[#allocation3 + %s557_s22]] }
  0x3b   : > { %p1026_p6 = scmp.eq.s32.totalorder %s660_s29, 0 }
  0x3d   : > { %664 = sbr.rel (%p1026_p6) target bundleno = 490 (0x1ea), region = 52 }
  0x42   : > { %v1114_v1 = vld [vmem:[%s566_s12 + $0x8] sm:$0xff]   ;;  %v1202_v2 = vmov 0.0   ;;  %v1115_v3 = vld [vmem:[%s566_s12] sm:$0xff]   ;;  %vm1203_vm1 = vmmov 0   ;;  %v1117_v4 = vld [vmem:[%s1302_s23 + $0x18] sm:$0xff]   ;;  %vm697_vm2 = vcmask 261120  }
  0x43   : > { %1054 = vmatprep.subr.bf16.mxu0 %v1202_v2  ;;  %1062 = vmatprep.subr.bf16.mxu1 %v1202_v2  ;;  %v1116_v5 = vld [vmem:[%s1364_s3] sm:$0xff]   ;;  %v1118_v6 = vld [vmem:[%s1302_s23 + $0x10] sm:$0xff]   ;;  %v1119_v7 = vld [vmem:[%s1302_s23 + $0x8] sm:$0xff]   ;;  %v1204_v10 = vmov 0   ;;  %vm777_vm3 = vcmask 523264  }
  0x44   : > { %1055 = vmatpush3.bf16.msra.mxu0 %v1114_v1  ;;  %1058 = vmatprep.mubr.msk.bf16.mxu0 %vm1203_vm1, %v1202_v2  ;;  %v1120_v8 = vld [vmem:[%s1302_s23] sm:$0xff]   ;;  %v666_v11 = vld [vmem:[%s1288_s27 + $0x8] sm:$0xff] }
  0x45   : > { %1056 = vmatprep.subr.bf16.mxu0 %v1202_v2  ;;  %1070 = vmatprep.mubr.msk.bf16.mxu1 %vm1203_vm1, %v1202_v2  ;;  %v665_v9 = vld [vmem:[%s1288_s27] sm:$0xff]  ;;  %v823_v30 = vld [vmem:[#allocation5 + $0x8] sm:$0xff] }
  0x46   : > { %1063 = vmatpush3.bf16.msra.mxu1 %v1117_v4  ;;  %1113 = vset.pattern.permute.xlu0 %v1204_v10  ;;  %v1027_v12 = vld [vmem:[%s588_s18] ss:$0 sm:$0xff] }
  0x47   : > { %1064 = vmatprep.subr.bf16.mxu1 %v1202_v2  ;;  %826 = vperm.xlu0 %1113, %v665_v9   ;;  %v822_v24 = vld [vmem:[#allocation5] sm:$0xff] }
  0x48   : > { %1057 = vmatpush3.bf16.msra.mxu0 %v1115_v3  ;;  %v1037_v34 = vld [vmem:[%s633_s26] ss:$0 sm:$0xff] }
  0x4a   : > { %1065 = vmatpush3.bf16.msra.mxu1 %v1118_v6 }
  0x4b   : > { %1059 = vmatmul.mubr.msk.bf16.vlgmr.msra.gmra.mxu0 %vm697_vm2, %v1116_v5  ;;  %1066 = vmatprep.subr.bf16.mxu1 %v1202_v2 }
  0x4c   : > { %831 = vperm.xlu0 %1113, %v666_v11  }
  0x4e   : > { %1067 = vmatpush3.bf16.msra.mxu1 %v1119_v7 }
  0x4f   : > { %1068 = vmatprep.subr.bf16.mxu1 %v1202_v2 }
  0x52   : > { %1069 = vmatpush3.bf16.msra.mxu1 %v1120_v8 }
  0xc2   : > { %v827_v22 = vpop.permute.xlu0 %826 }
  0xc3   : > { %v852_v35 = vmul.f32 %v1037_v34, %v827_v22 }
  0xc7   : > { %v832_v28 = vpop.permute.xlu0 %831 }
  0xc8   : > { %v853_v38 = vmul.f32 %v1037_v34, %v832_v28 }
 0x10b   : > { %v735_v13 = vpop.f32.mrf.mxu0 }
 0x10c   : > { %v736_v15 = vadd.f32 %v1027_v12, %v735_v13 }
 0x10d   : > { %v1060_v14 = vpop.f32.mrf.mxu0 }
 0x10e   : > { %v742_v19 = vmax.f32 %v736_v15, 0.0 }
 0x10f   : > { %v738_v16 = vpop.f32.mrf.mxu0 }
 0x110   : > { %v739_v17 = vadd.f32 %v1027_v12, %v738_v16 }
 0x111   : > { %v1061_v18 = vpop.f32.mrf.mxu0 }
 0x112   : > { %v743_v20 = vmax.f32 %v739_v17, 0.0 }
 0x114   : > { %v744_v21 = vpack.c.bf16 %v743_v20, %v742_v19 }
 0x116   : > { %1071 = vmatmul.mubr.msk.bf16.vlgmr.msra.gmra.mxu1 %vm777_vm3, %v744_v21 }
 0x1d6   : > { %v815_v23 = vpop.f32.mrf.mxu1 }
 0x1d7   : > { %v834_v25 = vmul.f32 %v827_v22, %v815_v23 }
 0x1d8   : > { %v1072_v26 = vpop.f32.mrf.mxu1 }
 0x1d9   : > { %v836_v27 = vadd.f32 %v834_v25, %v822_v24 }
 0x1da   : > { %v818_v29 = vpop.f32.mrf.mxu1 }
 0x1db   : > { %838 = vst.msk [vmem:[#allocation5] sm:$0xff] %vm697_vm2, %v836_v27  ;;  %v835_v31 = vmul.f32 %v832_v28, %v818_v29 }
 0x1dc   : > { %v1073_v32 = vpop.f32.mrf.mxu1 }
 0x1dd   : > { %v837_v33 = vadd.f32 %v835_v31, %v823_v30 }
 0x1df   : > { %839 = vst.msk [vmem:[#allocation5 + $0x8] sm:$0xff] %vm697_vm2, %v837_v33 }
 0x1e2   : > { %v843_v36 = vld [vmem:[#allocation5] sm:$0xff] }
 0x1e3   : > { %v854_v37 = vadd.f32 %v852_v35, %v843_v36 }
 0x1e5   : > { %856 = vst.msk [vmem:[#allocation5] sm:$0xff] %vm697_vm2, %v854_v37 }
 0x1e6   : > { %v844_v39 = vld [vmem:[#allocation5 + $0x8] sm:$0xff] }
 0x1e7   : > { %v855_v40 = vadd.f32 %v853_v38, %v844_v39 }
 0x1e9   : > { %857 = vst.msk [vmem:[#allocation5 + $0x8] sm:$0xff] %vm697_vm2, %v855_v40 }
 0x1ea PF: > { %p1338_p7 = scmp.eq.s32.totalorder %s1001_s16, 4  ;;  %s1205_s30 = smov [#allocation5]  }
 0x1eb   : > { %s867_s12 = sshll.u32 %s1205_s30, 4  ;;  %s868_s12 = int_to_ptr.vmem [resolvable:$true] %s867_s12 }
 0x1ec   : > { %s1145_s13 = scalar_lea.vmem %s868_s12, 256  ;;  %p1152_p11 = scmp.lt.s32.totalorder %s868_s12, %s868_s12 }
 0x1ed   : > { %p1146_p8 = scmp.ne.s32.totalorder %s868_s12, %s1145_s13  ;;  %p1153_p12 = scmp.lt.s32.totalorder %s1145_s13, %s1145_s13 }
 0x1ef   : > { %p1147_p9 = pnand %p1146_p8, %p1338_p7  ;;  %p1154_p13 = por %p1153_p12, %p1152_p11 }
 0x1f1   : > { %p1148_p10 = pneg %p1147_p9 }
 0x1f3   : > { %p1155_p0 = pnand %p1154_p13, %p1148_p10 }
 0x1f5   : > { %1158 = shalt.err (!%p1155_p0)
}
 0x1f6   : > { %s1206_s0 = smov 128   ;;  %s1207_s16 = smov 8  }
 0x1f7   : > { %1075 = dma.vmem_to_hbm [thread:$0]  (%p1338_p7), %s868_s12, 256, %s1369_s8, [#allocation6], %s1206_s0, %s1206_s0, %s1207_s16  }
 0x1f8   : > { %1184 = dma.done.wait (%p1338_p7), [#allocation6], 256  }
 0x1f9   : > { %1186 = vsyncadd (%p1338_p7), [#allocation6], 4294967040 }
 0x1fa PF: > { %s29_s15 = sadd.s32 1, %s1197_s15   ;;  %s1372_s1 = smov %s1193_s14 }
 0x1fb   : > { %p26_p1 = scmp.ge.s32.totalorder %s29_s15, 7   ;;  %s1373_s14 = smov %s1375_s17 }
 0x1fd   :  { %28 = sbr.rel (!%p26_p1) target bundleno = 27 (0x1b), region = 99 }
 0x202   :  { %883 = vsyncpa [#allocation6], 1 }
 0x203   :  { %885 = vsyncpa [#allocation6 + $0x1], 1 }

</bundles_post_ra>
